<compile_context>
chip_gen: v6e
topology: v6e:2x2x1
jax: 0.10.0
libtpu: 0.0.40
codegen_flags: <defaults>
</compile_context>

<pallas_src>
import jax
import jax.numpy as jnp
from jax.experimental import pallas as pl
from jax.experimental.pallas import tpu as pltpu


def _make_textcnn_kernel(tb, seq, dim, h_max, fk):
    rows = tb * seq

    def kernel(x_ref, wconv_ref, biasmask_ref, wfc_ref, bfc_ref, out_ref):
        # (TB, S, D) bf16 block -> (TB*S, D) bf16 rows (merge of leading dims).
        x2 = x_ref[...].reshape(rows, dim)

        # Zero-extend by (h_max - 1) rows so every shifted slice has `rows` rows.
        if h_max > 1:
            xp = jnp.concatenate(
                [x2, jnp.zeros((h_max - 1, dim), x2.dtype)], axis=0)
        else:
            xp = x2

        # Conv = sum over taps of (shifted bf16 rows) @ (per-tap bf16 weight),
        # accumulated in f32.  No f32 im2col staging / lane concat.  Rows that
        # run past a sentence's end pick up neighbor/zero rows; those positions
        # are killed by the -1e30 bias-mask below (or hit zero-padded taps).
        acc = jnp.zeros((rows, fk), jnp.float32)
        for dh in range(h_max):
            acc = acc + jnp.dot(xp[dh:dh + rows, :], wconv_ref[dh],
                                preferred_element_type=jnp.float32)

        # biasmask = conv bias where the window is valid, -1e30 where it is not;
        # ReLU clamps invalid positions to exactly 0 so the max-pool ignores them.
        scores = acc.reshape(tb, seq, fk) + biasmask_ref[...]
        scores = jnp.maximum(scores, 0.0)
        pooled = jnp.max(scores, axis=1)                      # (TB, FK)

        # TODO(synk): nn.Dropout applied as identity (eval semantics); training-
        # mode masking would use pltpu.prng_seed / pltpu.prng_random_bits.
        out = jnp.dot(pooled.astype(jnp.bfloat16), wfc_ref[...],
                      preferred_element_type=jnp.float32) + bfc_ref[...]
        out_ref[...] = out.astype(out_ref.dtype)

    return kernel


def _pick_batch_tile(batch):
    """Batch tile: multiple of 8 (sublane-aligned output block), capped at 512,
    and chosen so the grid has >= 2 steps when the batch allows (v7x megacore)."""
    b8 = max(8, ((batch + 7) // 8) * 8)
    if b8 <= 16:
        return b8                      # single tiny step; nothing worth splitting
    tb = min(512, pl.cdiv(b8, 2))
    return ((tb + 7) // 8) * 8


def text_cnn_forward(x_ids, params, *, kernel_sizes, max_sen_len):
    """x_ids: (max_sen_len, batch) int32 — same convention as the PyTorch forward."""
    embed_table = params["embed"]                       # (vocab, D)
    seq = max_sen_len
    dim = embed_table.shape[1]
    filt = params["conv_w"][0].shape[2]
    nk = len(kernel_sizes)
    fk = filt * nk
    num_cls = params["fc_w"].shape[1]
    h_max = max(kernel_sizes)
    batch = x_ids.shape[1]

    tb = _pick_batch_tile(batch)
    nb = pl.cdiv(batch, tb)
    b_pad = nb * tb

    # Glue: pad the *ids* (tiny) so the big (B, S, D) bf16 slab is produced at its
    # padded size directly — no second padded copy of the activation slab.
    ids = x_ids.T                                                 # (B, S)
    if b_pad != batch:
        ids = jnp.pad(ids, ((0, b_pad - batch), (0, 0)))
    embed_x = jnp.take(embed_table, ids, axis=0).astype(jnp.bfloat16)  # (B,S,D)

    # Fuse the nk conv branches: zero-pad each (h, D, F) weight to (h_max, D, F)
    # and concat on the filter axis -> (h_max, D, FK).  Build the additive
    # bias-mask: bias where s < L_i, -1e30 otherwise.
    w_parts, bm_parts = [], []
    for i, h in enumerate(kernel_sizes):
        w = params["conv_w"][i].astype(jnp.float32)               # (h, D, F)
        w_parts.append(jnp.pad(w, ((0, h_max - h), (0, 0), (0, 0))))
        b = params["conv_b"][i].astype(jnp.float32).reshape(1, filt)
        valid = (jnp.arange(seq) < (seq - h + 1))[:, None]        # (S, 1)
        bm_parts.append(jnp.where(valid, jnp.broadcast_to(b, (seq, filt)),
                                  jnp.float32(-1e30)))            # (S, F)
    w_conv = jnp.concatenate(w_parts, axis=2).astype(jnp.bfloat16)  # (h_max,D,FK)
    biasmask = jnp.concatenate(bm_parts, axis=1)                    # (S, FK) f32
    w_fc = params["fc_w"].astype(jnp.bfloat16)                      # (FK, C)
    b_fc = params["fc_b"].astype(jnp.float32)                       # (1, C)

    # VMEM limit sized to the real per-step footprint (double-buffered input,
    # zero-extended bf16 copy + shifted slices, f32 score tensors) with headroom.
    in_block = tb * seq * dim * 2
    acc_block = tb * seq * fk * 4
    est = 5 * in_block + 3 * acc_block + (1 << 20)
    vmem_limit = int(min(32 << 20, max(4 << 20, 2 * est)))

    out = pl.pallas_call(
        _make_textcnn_kernel(tb, seq, dim, h_max, fk),
        out_shape=jax.ShapeDtypeStruct((b_pad, num_cls), jnp.float32),
        grid=(nb,),
        in_specs=[
            pl.BlockSpec((tb, seq, dim), lambda b: (b, 0, 0)),
            pl.BlockSpec((h_max, dim, fk), lambda b: (0, 0, 0)),
            pl.BlockSpec((seq, fk), lambda b: (0, 0)),
            pl.BlockSpec((fk, num_cls), lambda b: (0, 0)),
            pl.BlockSpec((1, num_cls), lambda b: (0, 0)),
        ],
        out_specs=pl.BlockSpec((tb, num_cls), lambda b: (b, 0)),
        compiler_params=pltpu.CompilerParams(
            dimension_semantics=("parallel",),
            vmem_limit_bytes=vmem_limit),
    )(embed_x, w_conv, biasmask, w_fc, b_fc)
    return out[:batch]


def reference_forward(x_ids, params, *, kernel_sizes, max_sen_len):
    """Pure-JAX reference matching the PyTorch forward (eval mode). Embedding and
    conv/fc weights are rounded to bf16 to mirror what the kernel feeds the MXU."""
    emb = params["embed"].astype(jnp.bfloat16).astype(jnp.float32)
    embed_x = jnp.take(emb, x_ids.T, axis=0)                      # (B, S, D)
    feats = []
    for i, h in enumerate(kernel_sizes):
        w = params["conv_w"][i].astype(jnp.bfloat16).astype(jnp.float32)
        b = params["conv_b"][i]
        L = max_sen_len - h + 1
        windows = jnp.stack([embed_x[:, dh:dh + L, :] for dh in range(h)], axis=0)
        scores = jnp.einsum("hbld,hdf->blf", windows, w,
                            precision=jax.lax.Precision.HIGHEST) + b
        scores = jnp.maximum(scores, 0.0)
        feats.append(jnp.max(scores, axis=1))                     # (B, F)
    feat = jnp.concatenate(feats, axis=-1).astype(jnp.bfloat16).astype(jnp.float32)
    w_fc = params["fc_w"].astype(jnp.bfloat16).astype(jnp.float32)
    return jnp.dot(feat, w_fc,
                   precision=jax.lax.Precision.HIGHEST) + params["fc_b"]


if __name__ == "__main__":
    # args (small, consistent with the module's __init__)
    vocab_len = 32
    embed_dim = 32
    filter_dim = 8
    class_num = 4
    kernel_sizes = (3, 4, 5)
    max_sen_len = 16
    batch = 2

    key = jax.random.PRNGKey(0)
    keys = jax.random.split(key, 4 + 2 * len(kernel_sizes))

    params = {
        "embed": 0.1 * jax.random.normal(keys[0], (vocab_len, embed_dim), jnp.float32),
        "conv_w": [],
        "conv_b": [],
        # fc: torch (class_num, F*nk) weight, stored transposed as (F*nk, class_num)
        "fc_w": 0.1 * jax.random.normal(
            keys[1], (filter_dim * len(kernel_sizes), class_num), jnp.float32),
        "fc_b": 0.1 * jax.random.normal(keys[2], (1, class_num), jnp.float32),
    }
    for i, h in enumerate(kernel_sizes):
        # torch Conv2d weight (F, 1, h, D) reshaped/transposed to (h, D, F)
        params["conv_w"].append(
            0.1 * jax.random.normal(keys[3 + 2 * i], (h, embed_dim, filter_dim),
                                    jnp.float32))
        params["conv_b"].append(
            0.1 * jax.random.normal(keys[4 + 2 * i], (1, filter_dim), jnp.float32))

    # input token ids: (max_sen_len, batch), as fed to the PyTorch forward
    x_ids = jax.random.randint(keys[-1], (max_sen_len, batch), 0, vocab_len,
                               dtype=jnp.int32)

    out = text_cnn_forward(x_ids, params, kernel_sizes=kernel_sizes,
                           max_sen_len=max_sen_len)
    out = jax.block_until_ready(out)

    ref = reference_forward(x_ids, params, kernel_sizes=kernel_sizes,
                            max_sen_len=max_sen_len)
    assert out.shape == (batch, class_num), out.shape
    max_diff = float(jnp.max(jnp.abs(out - ref)))
    assert jnp.allclose(out, ref, atol=1e-3, rtol=1e-3), (max_diff, out, ref)
    print("KERNEL_OK")
</pallas_src>

<mosaic_0001>
module attributes {stable_mosaic.version = 11 : i64} {
  func.func @kernel(%arg0: i32, %arg1: memref<8x16x32xbf16, #tpu.memory_space<vmem>>, %arg2: memref<5x32x24xbf16, #tpu.memory_space<vmem>>, %arg3: memref<16x24xf32, #tpu.memory_space<vmem>>, %arg4: memref<24x4xbf16, #tpu.memory_space<vmem>>, %arg5: memref<1x4xf32, #tpu.memory_space<vmem>>, %arg6: memref<8x4xf32, #tpu.memory_space<vmem>>) attributes {dimension_semantics = [#tpu.dimension_semantics<parallel>], iteration_bounds = array<i64: 1>, scalar_prefetch = 0 : i64, scratch_operands = 0 : i64, tpu.core_type = #tpu.core_type<tc>, window_params = [{transform_indices = @transform_0, window_bounds = array<i64: 8, 16, 32>}, {pipeline_mode = #tpu.pipeline_mode<synchronous>, transform_indices = @transform_1, window_bounds = array<i64: 5, 32, 24>}, {pipeline_mode = #tpu.pipeline_mode<synchronous>, transform_indices = @transform_2, window_bounds = array<i64: 16, 24>}, {pipeline_mode = #tpu.pipeline_mode<synchronous>, transform_indices = @transform_3, window_bounds = array<i64: 24, 4>}, {pipeline_mode = #tpu.pipeline_mode<synchronous>, transform_indices = @transform_4, window_bounds = array<i64: 1, 4>}, {transform_indices = @transform_5, window_bounds = array<i64: 8, 4>}]} {
    %c0 = arith.constant 0 : index
    %c0_0 = arith.constant 0 : index
    %c0_1 = arith.constant 0 : index
    %0 = vector.load %arg1[%c0, %c0_0, %c0_1] : memref<8x16x32xbf16, #tpu.memory_space<vmem>>, vector<8x16x32xbf16>
    %1 = vector.shape_cast %0 : vector<8x16x32xbf16> to vector<128x32xbf16>
    %cst = arith.constant 0.000000e+00 : bf16
    %2 = vector.broadcast %cst : bf16 to vector<4x32xbf16>
    %3 = tpu.concatenate %1, %2 in 0 : vector<128x32xbf16>, vector<4x32xbf16> -> vector<132x32xbf16>
    %cst_2 = arith.constant 0.000000e+00 : f32
    %4 = vector.broadcast %cst_2 : f32 to vector<128x24xf32>
    %5 = vector.extract_strided_slice %3 {offsets = [0, 0], sizes = [128, 32], strides = [1, 1]} : vector<132x32xbf16> to vector<128x32xbf16>
    %c0_3 = arith.constant 0 : index
    %c0_4 = arith.constant 0 : index
    %c0_5 = arith.constant 0 : index
    %6 = vector.load %arg2[%c0_3, %c0_4, %c0_5] : memref<5x32x24xbf16, #tpu.memory_space<vmem>>, vector<1x32x24xbf16>
    %7 = vector.shape_cast %6 : vector<1x32x24xbf16> to vector<32x24xbf16>
    %cst_6 = arith.constant dense<0.000000e+00> : vector<128x24xf32>
    %8 = tpu.matmul %5, %7, %cst_6 {dimension_numbers = #tpu.dot_dimension_numbers<[1], [0], [0], [1], [0, 0, 1, 1], [], []>} : vector<128x32xbf16>, vector<32x24xbf16>, vector<128x24xf32> -> vector<128x24xf32>
    %9 = arith.addf %4, %8 : vector<128x24xf32>
    %10 = vector.extract_strided_slice %3 {offsets = [1, 0], sizes = [128, 32], strides = [1, 1]} : vector<132x32xbf16> to vector<128x32xbf16>
    %c1 = arith.constant 1 : index
    %c0_7 = arith.constant 0 : index
    %c0_8 = arith.constant 0 : index
    %11 = vector.load %arg2[%c1, %c0_7, %c0_8] : memref<5x32x24xbf16, #tpu.memory_space<vmem>>, vector<1x32x24xbf16>
    %12 = vector.shape_cast %11 : vector<1x32x24xbf16> to vector<32x24xbf16>
    %cst_9 = arith.constant dense<0.000000e+00> : vector<128x24xf32>
    %13 = tpu.matmul %10, %12, %cst_9 {dimension_numbers = #tpu.dot_dimension_numbers<[1], [0], [0], [1], [0, 0, 1, 1], [], []>} : vector<128x32xbf16>, vector<32x24xbf16>, vector<128x24xf32> -> vector<128x24xf32>
    %14 = arith.addf %9, %13 : vector<128x24xf32>
    %15 = vector.extract_strided_slice %3 {offsets = [2, 0], sizes = [128, 32], strides = [1, 1]} : vector<132x32xbf16> to vector<128x32xbf16>
    %c2 = arith.constant 2 : index
    %c0_10 = arith.constant 0 : index
    %c0_11 = arith.constant 0 : index
    %16 = vector.load %arg2[%c2, %c0_10, %c0_11] : memref<5x32x24xbf16, #tpu.memory_space<vmem>>, vector<1x32x24xbf16>
    %17 = vector.shape_cast %16 : vector<1x32x24xbf16> to vector<32x24xbf16>
    %cst_12 = arith.constant dense<0.000000e+00> : vector<128x24xf32>
    %18 = tpu.matmul %15, %17, %cst_12 {dimension_numbers = #tpu.dot_dimension_numbers<[1], [0], [0], [1], [0, 0, 1, 1], [], []>} : vector<128x32xbf16>, vector<32x24xbf16>, vector<128x24xf32> -> vector<128x24xf32>
    %19 = arith.addf %14, %18 : vector<128x24xf32>
    %20 = vector.extract_strided_slice %3 {offsets = [3, 0], sizes = [128, 32], strides = [1, 1]} : vector<132x32xbf16> to vector<128x32xbf16>
    %c3 = arith.constant 3 : index
    %c0_13 = arith.constant 0 : index
    %c0_14 = arith.constant 0 : index
    %21 = vector.load %arg2[%c3, %c0_13, %c0_14] : memref<5x32x24xbf16, #tpu.memory_space<vmem>>, vector<1x32x24xbf16>
    %22 = vector.shape_cast %21 : vector<1x32x24xbf16> to vector<32x24xbf16>
    %cst_15 = arith.constant dense<0.000000e+00> : vector<128x24xf32>
    %23 = tpu.matmul %20, %22, %cst_15 {dimension_numbers = #tpu.dot_dimension_numbers<[1], [0], [0], [1], [0, 0, 1, 1], [], []>} : vector<128x32xbf16>, vector<32x24xbf16>, vector<128x24xf32> -> vector<128x24xf32>
    %24 = arith.addf %19, %23 : vector<128x24xf32>
    %25 = vector.extract_strided_slice %3 {offsets = [4, 0], sizes = [128, 32], strides = [1, 1]} : vector<132x32xbf16> to vector<128x32xbf16>
    %c4 = arith.constant 4 : index
    %c0_16 = arith.constant 0 : index
    %c0_17 = arith.constant 0 : index
    %26 = vector.load %arg2[%c4, %c0_16, %c0_17] : memref<5x32x24xbf16, #tpu.memory_space<vmem>>, vector<1x32x24xbf16>
    %27 = vector.shape_cast %26 : vector<1x32x24xbf16> to vector<32x24xbf16>
    %cst_18 = arith.constant dense<0.000000e+00> : vector<128x24xf32>
    %28 = tpu.matmul %25, %27, %cst_18 {dimension_numbers = #tpu.dot_dimension_numbers<[1], [0], [0], [1], [0, 0, 1, 1], [], []>} : vector<128x32xbf16>, vector<32x24xbf16>, vector<128x24xf32> -> vector<128x24xf32>
    %29 = arith.addf %24, %28 : vector<128x24xf32>
    %30 = vector.shape_cast %29 : vector<128x24xf32> to vector<8x16x24xf32>
    %c0_19 = arith.constant 0 : index
    %c0_20 = arith.constant 0 : index
    %31 = vector.load %arg3[%c0_19, %c0_20] : memref<16x24xf32, #tpu.memory_space<vmem>>, vector<16x24xf32>
    %32 = vector.shape_cast %31 : vector<16x24xf32> to vector<1x16x24xf32>
    %33 = vector.broadcast %32 : vector<1x16x24xf32> to vector<8x16x24xf32>
    %34 = arith.addf %30, %33 : vector<8x16x24xf32>
    %cst_21 = arith.constant 0.000000e+00 : f32
    %35 = vector.broadcast %cst_21 : f32 to vector<8x16x24xf32>
    %36 = arith.maximumf %34, %35 : vector<8x16x24xf32>
    %cst_22 = arith.constant dense<0xFF800000> : vector<8x24xf32>
    %37 = vector.multi_reduction <maximumf>, %36, %cst_22 [1] : vector<8x16x24xf32> to vector<8x24xf32>
    %38 = arith.truncf %37 : vector<8x24xf32> to vector<8x24xbf16>
    %c0_23 = arith.constant 0 : index
    %c0_24 = arith.constant 0 : index
    %39 = vector.load %arg4[%c0_23, %c0_24] : memref<24x4xbf16, #tpu.memory_space<vmem>>, vector<24x4xbf16>
    %cst_25 = arith.constant dense<0.000000e+00> : vector<8x4xf32>
    %40 = tpu.matmul %38, %39, %cst_25 {dimension_numbers = #tpu.dot_dimension_numbers<[1], [0], [0], [1], [0, 0, 1, 1], [], []>} : vector<8x24xbf16>, vector<24x4xbf16>, vector<8x4xf32> -> vector<8x4xf32>
    %c0_26 = arith.constant 0 : index
    %c0_27 = arith.constant 0 : index
    %41 = vector.load %arg5[%c0_26, %c0_27] : memref<1x4xf32, #tpu.memory_space<vmem>>, vector<1x4xf32>
    %42 = vector.broadcast %41 : vector<1x4xf32> to vector<8x4xf32>
    %43 = arith.addf %40, %42 : vector<8x4xf32>
    %c0_28 = arith.constant 0 : index
    %c0_29 = arith.constant 0 : index
    %44 = vector.load %arg6[%c0_28, %c0_29] : memref<8x4xf32, #tpu.memory_space<vmem>>, vector<8x4xf32>
    tpu.vector_store %arg6[%c0_28, %c0_29], %43 {strides = array<i32>} : memref<8x4xf32, #tpu.memory_space<vmem>>, vector<8x4xf32>,
    return
  }
  func.func @transform_0(%arg0: i32) -> (i32, i32, i32) {
    %c0_i32 = arith.constant 0 : i32
    %c0_i32_0 = arith.constant 0 : i32
    %c0_i32_1 = arith.constant 0 : i32
    return %arg0, %c0_i32, %c0_i32_0 : i32, i32, i32
  }
  func.func @transform_1(%arg0: i32) -> (i32, i32, i32) {
    %c0_i32 = arith.constant 0 : i32
    %c0_i32_0 = arith.constant 0 : i32
    %c0_i32_1 = arith.constant 0 : i32
    %c0_i32_2 = arith.constant 0 : i32
    return %c0_i32, %c0_i32_0, %c0_i32_1 : i32, i32, i32
  }
  func.func @transform_2(%arg0: i32) -> (i32, i32) {
    %c0_i32 = arith.constant 0 : i32
    %c0_i32_0 = arith.constant 0 : i32
    %c0_i32_1 = arith.constant 0 : i32
    return %c0_i32, %c0_i32_0 : i32, i32
  }
  func.func @transform_3(%arg0: i32) -> (i32, i32) {
    %c0_i32 = arith.constant 0 : i32
    %c0_i32_0 = arith.constant 0 : i32
    %c0_i32_1 = arith.constant 0 : i32
    return %c0_i32, %c0_i32_0 : i32, i32
  }
  func.func @transform_4(%arg0: i32) -> (i32, i32) {
    %c0_i32 = arith.constant 0 : i32
    %c0_i32_0 = arith.constant 0 : i32
    %c0_i32_1 = arith.constant 0 : i32
    return %c0_i32, %c0_i32_0 : i32, i32
  }
  func.func @transform_5(%arg0: i32) -> (i32, i32) {
    %c0_i32 = arith.constant 0 : i32
    %c0_i32_0 = arith.constant 0 : i32
    return %arg0, %c0_i32 : i32, i32
  }
}

</mosaic_0001>

<bundles_post_ra>
// kernel: tpu_custom_call.1
= control target key start
LH: loop header
LB: loop body
LE: loop exit
PB: predicated region body
PF: predicated region fallthrough
CT: control target
= control target key end

     0   :  { %vm86_vm0 = vsmask.f32 7424  ;;  %vm167_vm1 = vcmask 261120   ;;  %v1435_v21 = vmov 0   ;;  %vm420_vm2 = vcmask 1046528   ;;  %s1831_s1 = inlined_call_operand.vmem [shape: bf16[5,32,24], index: 1, kind: input, shape index: {}]   ;;  %s1832_s0 = inlined_call_operand.vmem [shape: bf16[8,16,32], index: 0, kind: input, shape index: {}]   ;;  %s1833_s3 = inlined_call_operand.vmem [shape: bf16[24,4], index: 3, kind: input, shape index: {}]   ;;  %s1834_s2 = inlined_call_operand.vmem [shape: f32[16,24], index: 2, kind: input, shape index: {}]   ;;  %s1835_s4 = inlined_call_operand.vmem [shape: f32[1,4], index: 4, kind: input, shape index: {}]   ;;  %s1836_s5 = inlined_call_operand.vmem [shape: f32[8,4], index: 5, kind: output, shape index: {}]  }
   0x1   :  { %v1415_v0 = vld [vmem:[%s1831_s1 + $0x18] sm:$0xff]   ;;  %v1416_v1 = vld [vmem:[%s1831_s1 + $0x10] sm:$0xff]   ;;  %v1477_v2 = vld [vmem:[%s1832_s0] sm:$0xff]   ;;  %v1523_v22 = vrot.slane %v1435_v21, 1  ;;  %vm784_vm3 = vcmask 1045504   ;;  %vm1119_vm5 = vcmask 1043456  }
   0x2   :  { %1300 = vmatprep.subr.bf16.mxu0 %v1415_v0  ;;  %1408 = vmatprep.subr.bf16.mxu1 %v1415_v0  ;;  %v1482_v3 = vld [vmem:[%s1832_s0 + $0x8] sm:$0xff]   ;;  %v88_v4 = vshrl.u32 %v1477_v2, 16  ;;  %v90_v5 = vshll.u32 %v1477_v2, 16  ;;  %v1490_v7 = vld [vmem:[%s1832_s0 + $0x30] sm:$0xff]   ;;  %v1495_v8 = vld [vmem:[%s1832_s0 + $0x38] sm:$0xff]   ;;  %v421_v58 = vrot.slane %v1477_v2, 1 }
   0x3   :  { %1301 = vmatpush3.bf16.msra.mxu0 %v1415_v0  ;;  %1410 = vmatpush3.bf16.msra.mxu1 %v1415_v0  ;;  %v95_v6 = vshll.u32 %v1482_v3, 16  ;;  %v99_v11 = vshrl.u32 %v1482_v3, 16  ;;  %v135_v12 = vshll.u32 %v1490_v7, 16  ;;  %v139_v13 = vshrl.u32 %v1490_v7, 16  ;;  %v1509_v16 = vld [vmem:[%s1832_s0 + $0x10] sm:$0xff]   ;;  %v1422_v17 = vld [vmem:[%s1831_s1 + $0x8] sm:$0xff]  }
   0x4   :  { %1302 = vmatprep.subr.bf16.mxu0 %v1416_v1  ;;  %1409 = vmatprep.subr.bf16.mxu1 %v1416_v1  ;;  %v92_v9 = vrot.slane %v90_v5, 1  ;;  %v143_v14 = vshll.u32 %v1495_v8, 16  ;;  %v147_v15 = vshrl.u32 %v1495_v8, 16  ;;  %v103_v25 = vshll.u32 %v1509_v16, 16  ;;  %v1423_v26 = vld [vmem:[%s1831_s1 + $0x28] sm:$0xff]   ;;  %v1424_v29 = vld [vmem:[%s1831_s1] sm:$0xff]  }
   0x5   :  { %v97_v10 = vrot.slane %v95_v6, 1  ;;  %v1518_v19 = vrot.slane %v135_v12, 1  ;;  %v107_v30 = vshrl.u32 %v1509_v16, 16  ;;  %v1547_v32 = vld [vmem:[%s1832_s0 + $0x18] sm:$0xff]   ;;  %v1552_v33 = vld [vmem:[%s1832_s0 + $0x20] sm:$0xff]   ;;  %v1572_v42 = vld [vmem:[%s1832_s0 + $0x28] sm:$0xff]  }
   0x6   :  { %v93_v18 = vor.u32 %v92_v9, %v88_v4  ;;  %v145_v20 = vrot.slane %v143_v14, 1  ;;  %v105_v31 = vrot.slane %v103_v25, 1  ;;  %v1427_v36 = vld [vmem:[%s1831_s1 + $0x20] sm:$0xff]   ;;  %v111_v39 = vshll.u32 %v1547_v32, 16  ;;  %v1429_v47 = vld [vmem:[%s1831_s1 + $0x38] sm:$0xff]   ;;  %v1430_v48 = vld [vmem:[%s1831_s1 + $0x48] sm:$0xff]  }
   0x7   :  { %1303 = vmatpush3.bf16.msra.mxu0 %v1416_v1  ;;  %1411 = vmatpush3.bf16.msra.mxu1 %v1416_v1  ;;  %v101_v24 = vor.u32 %v99_v11, %v97_v10  ;;  %v141_v27 = vor.u32 %v139_v13, %v1518_v19  ;;  %v115_v40 = vshrl.u32 %v1547_v32, 16  ;;  %v119_v41 = vshll.u32 %v1552_v33, 16  ;;  %v1431_v56 = vld [vmem:[%s1831_s1 + $0x30] sm:$0xff]  }
   0x8   :  { %1320 = vmatprep.subr.bf16.mxu1 %v1422_v17  ;;  %v98_v23 = vsel %vm86_vm0, %v93_v18, %v97_v10  ;;  %v149_v28 = vor.u32 %v147_v15, %v145_v20  ;;  %1340 = vmatprep.subr.bf16.mxu0 %v1423_v26  ;;  %v109_v38 = vor.u32 %v107_v30, %v105_v31  ;;  %v123_v43 = vshrl.u32 %v1552_v33, 16 }
   0x9   :  { %1304 = vmatprep.mubr.msk.bf16.mxu0 %vm167_vm1, %v98_v23  ;;  %v146_v34 = vsel %vm86_vm0, %v141_v27, %v145_v20  ;;  %v106_v37 = vsel %vm86_vm0, %v101_v24, %v105_v31  ;;  %v113_v44 = vrot.slane %v111_v39, 1  ;;  %v121_v45 = vrot.slane %v119_v41, 1  ;;  %v1432_v23 = vld [vmem:[%s1831_s1 + $0x40] sm:$0xff]  }
   0xa   :  { %v154_v35 = vsel %vm86_vm0, %v149_v28, %v1523_v22  ;;  %1316 = vmatprep.mubr.msk.bf16.mxu1 %vm167_vm1, %v146_v34  ;;  %1305 = vmatmul.mubr.msk.bf16.vlgmr.msra.gmra.mxu0 %vm167_vm1, %v106_v37  ;;  %v127_v46 = vshll.u32 %v1572_v42, 16  ;;  %v131_v54 = vshrl.u32 %v1572_v42, 16  ;;  %v422_v59 = vrot.slane %v1482_v3, 1 }
   0xb   :  { %1317 = vmatmul.mubr.msk.bf16.vlgmr.msra.gmra.mxu1 %vm167_vm1, %v154_v35  ;;  %1341 = vmatpush3.bf16.msra.mxu0 %v1423_v26  ;;  %v114_v49 = vsel %vm86_vm0, %v109_v38, %v113_v44  ;;  %v117_v50 = vor.u32 %v115_v40, %v113_v44  ;;  %v125_v51 = vor.u32 %v123_v43, %v121_v45  ;;  %v424_v62 = vrot.slane %v1509_v16, 1 }
   0xc   :  { %1321 = vmatpush3.bf16.msra.mxu1 %v1422_v17  ;;  %1324 = vmatprep.mubr.msk.bf16.mxu1 %vm167_vm1, %v1477_v2  ;;  %v129_v52 = vrot.slane %v127_v46, 1  ;;  %v423_v61 = vsel %vm420_vm2, %v421_v58, %v422_v59  ;;  %v796_v63 = vrot.slane %v1490_v7, 2  ;;  %v798_v0 = vrot.slane %v1495_v8, 2 }
   0xd   :  { %1322 = vmatprep.subr.bf16.mxu1 %v1424_v29  ;;  %1342 = vmatprep.subr.bf16.mxu0 %v1427_v36  ;;  %v122_v53 = vsel %vm86_vm0, %v117_v50, %v121_v45  ;;  %v426_v1 = vrot.slane %v1547_v32, 1  ;;  %v425_v10 = vsel %vm420_vm2, %v422_v59, %v424_v62  ;;  %v593_v17 = vrot.slane %v88_v4, 1 }
   0xe   :  { %1308 = vmatprep.mubr.msk.bf16.mxu0 %vm167_vm1, %v114_v49  ;;  %v130_v55 = vsel %vm86_vm0, %v125_v51, %v129_v52  ;;  %v133_v57 = vor.u32 %v131_v54, %v129_v52  ;;  %v1630_v9 = vsel %vm784_vm3, %v796_v63, %v798_v0  ;;  %v597_v18 = vrot.slane %v95_v6, 2 }
   0xf   :  { %1343 = vmatpush3.bf16.msra.mxu0 %v1427_v36  ;;  %v596_v20 = vrot.slane %v99_v11, 1  ;;  %v427_v24 = vsel %vm420_vm2, %v424_v62, %v426_v1  ;;  %v428_v4 = vrot.slane %v1552_v33, 1  ;;  %vm592_vm4 = vsmask.f32 6400 }
  0x10   :  { %1323 = vmatpush3.bf16.msra.mxu1 %v1424_v29  ;;  %1380 = vmatprep.subr.bf16.mxu0 %v1430_v48  ;;  %v138_v60 = vsel %vm86_vm0, %v133_v57, %v1518_v19  ;;  %v594_v19 = vrot.slane %v90_v5, 2  ;;  %v430_v5 = vrot.slane %v1572_v42, 1  ;;  %v601_v26 = vrot.slane %v103_v25, 2 }
  0x11   :  { %1360 = vmatprep.subr.bf16.mxu1 %v1429_v47  ;;  %v598_v11 = vor.u32 %v597_v18, %v596_v20  ;;  %v600_v27 = vrot.slane %v107_v30, 1  ;;  %v429_v28 = vsel %vm420_vm2, %v426_v1, %v428_v4  ;;  %v604_v34 = vrot.slane %v115_v40, 1 }
  0x12   :  { %1309 = vmatmul.mubr.msk.bf16.gmra.mxu0 %vm167_vm1, %v122_v53  ;;  %v595_v6 = vor.u32 %v594_v19, %v593_v17  ;;  %v431_v29 = vsel %vm420_vm2, %v428_v4, %v430_v5  ;;  %v605_v35 = vrot.slane %v111_v39, 2  ;;  %v432_v25 = vrot.slane %v1490_v7, 1 }
  0x13   :  { %1325 = vmatmul.mubr.msk.bf16.vlgmr.msra.gmra.mxu1 %vm167_vm1, %v1482_v3  ;;  %1312 = vmatprep.mubr.msk.bf16.mxu0 %vm167_vm1, %v130_v55  ;;  %v602_v30 = vor.u32 %v601_v26, %v600_v27  ;;  %v434_v36 = vrot.slane %v1495_v8, 1  ;;  %v608_v39 = vrot.slane %v123_v43, 1  ;;  %v609_v44 = vrot.slane %v119_v41, 2 }
  0x14   :  { %1328 = vmatprep.mubr.msk.bf16.mxu1 %vm167_vm1, %v1509_v16  ;;  %1361 = vmatpush3.bf16.msra.mxu1 %v1429_v47  ;;  %v599_v31 = vsel %vm592_vm4, %v595_v6, %v598_v11  ;;  %v606_v37 = vor.u32 %v605_v35, %v604_v34  ;;  %v433_v38 = vsel %vm420_vm2, %v430_v5, %v432_v25  ;;  %v613_v49 = vrot.slane %v127_v46, 2 }
  0x15   :  { %1362 = vmatprep.subr.bf16.mxu1 %v1431_v56  ;;  %v603_v40 = vsel %vm592_vm4, %v598_v11, %v602_v30  ;;  %v435_v45 = vsel %vm420_vm2, %v432_v25, %v434_v36  ;;  %v610_v43 = vor.u32 %v609_v44, %v608_v39  ;;  %v785_v50 = vrot.slane %v1477_v2, 2 }
  0x16   :  { %v607_v47 = vsel %vm592_vm4, %v602_v30, %v606_v37  ;;  %v786_v51 = vrot.slane %v1482_v3, 2  ;;  %v616_v52 = vrot.slane %v139_v13, 1  ;;  %v437_v46 = vsel %vm420_vm2, %v434_v36, %v1523_v22 }
  0x17   :  { %v611_v53 = vsel %vm592_vm4, %v606_v37, %v610_v43  ;;  %v621_v55 = vrot.slane %v143_v14, 2  ;;  %v620_v3 = vrot.slane %v147_v15, 1  ;;  %v790_v14 = vrot.slane %v1547_v32, 2 }
  0x18   :  { %1363 = vmatpush3.bf16.msra.mxu1 %v1431_v56  ;;  %v787_v2 = vsel %vm784_vm3, %v785_v50, %v786_v51  ;;  %v627_v15 = vrot.slane %v1435_v21, 2  ;;  %v794_v62 = vrot.slane %v1572_v42, 2  ;;  %v1436_v17 = vmov 0.0  }
  0x19   :  { %v622_v57 = vor.u32 %v621_v55, %v620_v3  ;;  %1400 = vmatprep.subr.bf16.mxu1 %v1436_v17  ;;  %vm1437_vm6 = vmmov 0   ;;  %vm985_vm7 = vcmask 195584   ;;  %vm1092_vm8 = vcmask 1041409  }
  0x1a   :  { %1313 = vmatmul.mubr.msk.bf16.gmra.mxu0 %vm167_vm1, %v138_v60  ;;  %vm1094_vm9 = vcmask 1042434   ;;  %vm1096_vm10 = vcmask 1043459   ;;  %vm1098_vm11 = vcmask 1044484   ;;  %vm1100_vm12 = vcmask 1045509  }
  0x1b   :  { %1329 = vmatmul.mubr.msk.bf16.gmra.mxu1 %vm167_vm1, %v1547_v32  ;;  %1344 = vmatprep.mubr.msk.bf16.mxu0 %vm167_vm1, %v423_v61  ;;  %v792_v32 = vrot.slane %v1552_v33, 2  ;;  %vm1102_vm13 = vcmask 1046534   ;;  %vm1104_vm14 = vcmask 1047559   ;;  %vm1163_vm15 = vcmask 31744  }
  0x1c   :  { %1332 = vmatprep.mubr.msk.bf16.mxu1 %vm167_vm1, %v1552_v33  ;;  %v801_v33 = vsel %vm784_vm3, %v798_v0, %v627_v15 }
  0x1d   :  { %v793_v1 = vsel %vm784_vm3, %v790_v14, %v792_v32 }
  0x22   :  { %1345 = vmatmul.mubr.msk.bf16.vlgmr.msra.gmra.mxu0 %vm167_vm1, %v425_v10  ;;  %v795_v10 = vsel %vm784_vm3, %v792_v32, %v794_v62 }
  0x23   :  { %1333 = vmatmul.mubr.msk.bf16.gmra.mxu1 %vm167_vm1, %v1572_v42  ;;  %1381 = vmatpush3.bf16.msra.mxu0 %v1430_v48  ;;  %v612_v48 = vrot.slane %v131_v54, 1  ;;  %v617_v54 = vrot.slane %v135_v12, 2  ;;  %v788_v12 = vrot.slane %v1509_v16, 2  ;;  %v628_v16 = vor.u32 %v627_v15, %v1523_v22  ;;  %v1433_v42 = vld [vmem:[%s1833_s3 + $0x8] ss:$0 sps:$4 sm:$0xff]  }
  0x24   :  { %1336 = vmatprep.mubr.msk.bf16.mxu1 %vm167_vm1, %v1490_v7  ;;  %1348 = vmatprep.mubr.msk.bf16.mxu0 %vm167_vm1, %v427_v24  ;;  %v797_v22 = vsel %vm784_vm3, %v794_v62, %v796_v63  ;;  %v1121_v7 = vsel %vm1119_vm5, %v1433_v42, 0  ;;  %v1434_v63 = vld [vmem:[%s1833_s3] sm:$0xff]  }
  0x25   :  { %1382 = vmatprep.subr.bf16.mxu0 %v1432_v23  ;;  %v614_v41 = vor.u32 %v613_v49, %v612_v48  ;;  %v618_v13 = vor.u32 %v617_v54, %v616_v52  ;;  %v789_v59 = vsel %vm784_vm3, %v786_v51, %v788_v12  ;;  %v791_v61 = vsel %vm784_vm3, %v788_v12, %v790_v14 }
  0x26   :  { %v629_v21 = vsel %vm592_vm4, %v622_v57, %v628_v16 }
  0x27   :  { %1383 = vmatpush3.bf16.msra.mxu0 %v1432_v23  ;;  %v615_v56 = vsel %vm592_vm4, %v610_v43, %v614_v41  ;;  %v619_v58 = vsel %vm592_vm4, %v614_v41, %v618_v13  ;;  %v623_v60 = vsel %vm592_vm4, %v618_v13, %v622_v57 }
  0x2a   :  { %1349 = vmatmul.mubr.msk.bf16.gmra.mxu0 %vm167_vm1, %v429_v28 }
  0x2b   :  { %1337 = vmatmul.mubr.msk.bf16.gmra.mxu1 %vm167_vm1, %v1495_v8  ;;  %1352 = vmatprep.mubr.msk.bf16.mxu0 %vm167_vm1, %v431_v29 }
  0x2c   :  { %1364 = vmatprep.mubr.msk.bf16.mxu1 %vm167_vm1, %v599_v31 }
  0x32   :  { %1353 = vmatmul.mubr.msk.bf16.gmra.mxu0 %vm167_vm1, %v433_v38 }
  0x33   :  { %1365 = vmatmul.mubr.msk.bf16.vlgmr.msra.gmra.mxu1 %vm167_vm1, %v603_v40  ;;  %1356 = vmatprep.mubr.msk.bf16.mxu0 %vm167_vm1, %v435_v45 }
  0x34   :  { %1368 = vmatprep.mubr.msk.bf16.mxu1 %vm167_vm1, %v607_v47  ;;  %1401 = vmatpush3.bf16.msra.mxu1 %v1121_v7 }
  0x35   :  { %1402 = vmatprep.subr.bf16.mxu1 %v1436_v17 }
  0x38   :  { %1403 = vmatpush3.bf16.msra.mxu1 %v1434_v63 }
  0x3a   :  { %1357 = vmatmul.mubr.msk.bf16.gmra.mxu0 %vm167_vm1, %v437_v46 }
  0x3b   :  { %1369 = vmatmul.mubr.msk.bf16.gmra.mxu1 %vm167_vm1, %v611_v53  ;;  %1384 = vmatprep.mubr.msk.bf16.mxu0 %vm167_vm1, %v787_v2 }
  0x3c   :  { %1372 = vmatprep.mubr.msk.bf16.mxu1 %vm167_vm1, %v615_v56 }
  0x42   :  { %1385 = vmatmul.mubr.msk.bf16.vlgmr.msra.gmra.mxu0 %vm167_vm1, %v789_v59 }
  0x43   :  { %1373 = vmatmul.mubr.msk.bf16.gmra.mxu1 %vm167_vm1, %v619_v58  ;;  %1388 = vmatprep.mubr.msk.bf16.mxu0 %vm167_vm1, %v791_v61 }
  0x44   :  { %1376 = vmatprep.mubr.msk.bf16.mxu1 %vm167_vm1, %v623_v60 }
  0x4a   :  { %1389 = vmatmul.mubr.msk.bf16.gmra.mxu0 %vm167_vm1, %v793_v1 }
  0x4b   :  { %1377 = vmatmul.mubr.msk.bf16.gmra.mxu1 %vm167_vm1, %v629_v21  ;;  %1392 = vmatprep.mubr.msk.bf16.mxu0 %vm167_vm1, %v795_v10 }
  0x4c   :  { %1404 = vmatprep.mubr.msk.bf16.mxu1 %vm1437_vm6, %v1436_v17 }
  0x52   :  { %1393 = vmatmul.mubr.msk.bf16.gmra.mxu0 %vm167_vm1, %v797_v22 }
  0x53   :  { %1396 = vmatprep.mubr.msk.bf16.mxu0 %vm167_vm1, %v1630_v9 }
  0x5a   :  { %1397 = vmatmul.mubr.msk.bf16.gmra.mxu0 %vm167_vm1, %v801_v33 }
  0xca   :  { %v1306_v8 = vpop.f32.mrf.mxu0 }
  0xcb   :  { %v1742_v0 = vpop.f32.mrf.mxu1 }
  0xcc   :  { %v226_v9 = vpop.f32.mrf.mxu0 }
  0xcd   :  { %v1744_v18 = vpop.f32.mrf.mxu1 }
  0xce   :  { %v1307_v19 = vpop.f32.mrf.mxu0 }
  0xcf   :  { %v1746_v20 = vpop.f32.mrf.mxu1 }
  0xd0   :  { %v229_v23 = vpop.f32.mrf.mxu0 }
  0xd1   :  { %v1748_v24 = vpop.f32.mrf.mxu1 }
  0xd2   :  { %v1310_v4 = vpop.f32.mrf.mxu0 }
  0xd3   :  { %v1326_v5 = vpop.f32.mrf.mxu1 }
  0xd4   :  { %v242_v6 = vpop.f32.mrf.mxu0  ;;  %v360_v16 = vadd.f32 %v1326_v5, %v1306_v8  ;;  %v1769_v8 = vld [vmem:[%s1834_s2] sm:$0xff] }
  0xd5   :  { %v351_v11 = vpop.f32.mrf.mxu1 }
  0xd6   :  { %v1311_v26 = vpop.f32.mrf.mxu0  ;;  %v352_v21 = vadd.f32 %v351_v11, %v226_v9 }
  0xd7   :  { %v1327_v27 = vpop.f32.mrf.mxu1 }
  0xd8   :  { %v245_v28 = vpop.f32.mrf.mxu0  ;;  %v363_v33 = vadd.f32 %v1327_v27, %v1307_v19 }
  0xd9   :  { %v354_v29 = vpop.f32.mrf.mxu1 }
  0xda   :  { %v1314_v31 = vpop.f32.mrf.mxu0  ;;  %v355_v7 = vadd.f32 %v354_v29, %v229_v23 }
  0xdb   :  { %v1330_v34 = vpop.f32.mrf.mxu1 }
  0xdc   :  { %v258_v35 = vpop.f32.mrf.mxu0  ;;  %v376_v63 = vadd.f32 %v1330_v34, %v1310_v4 }
  0xdd   :  { %v367_v25 = vpop.f32.mrf.mxu1 }
  0xde   :  { %v1315_v30 = vpop.f32.mrf.mxu0  ;;  %v368_v9 = vadd.f32 %v367_v25, %v242_v6 }
  0xdf   :  { %v1331_v36 = vpop.f32.mrf.mxu1 }
  0xe0   :  { %v261_v37 = vpop.f32.mrf.mxu0 }
  0xe1   :  { %v370_v38 = vpop.f32.mrf.mxu1 }
  0xe2   :  { %v1346_v39 = vpop.f32.mrf.mxu0 }
  0xe3   :  { %v1334_v40 = vpop.f32.mrf.mxu1  ;;  %v573_v1 = vadd.f32 %v1346_v39, %v360_v16  ;;  %v379_v16 = vadd.f32 %v1331_v36, %v1311_v26  ;;  %v1776_v26 = vld [vmem:[%s1834_s2 + $0x8] sm:$0xff] }
  0xe4   :  { %v508_v45 = vpop.f32.mrf.mxu0  ;;  %v392_v19 = vadd.f32 %v1334_v40, %v1314_v31 }
  0xe5   :  { %v383_v44 = vpop.f32.mrf.mxu1  ;;  %v571_v42 = vadd.f32 %v508_v45, %v352_v21 }
  0xe6   :  { %v1347_v48 = vpop.f32.mrf.mxu0  ;;  %v384_v27 = vadd.f32 %v383_v44, %v258_v35 }
  0xe7   :  { %v1335_v47 = vpop.f32.mrf.mxu1  ;;  %v574_v5 = vadd.f32 %v1347_v48, %v363_v33 }
  0xe8   :  { %v511_v43 = vpop.f32.mrf.mxu0  ;;  %v395_v4 = vadd.f32 %v1335_v47, %v1315_v30 }
  0xe9   :  { %v386_v49 = vpop.f32.mrf.mxu1 }
  0xea   :  { %v1350_v50 = vpop.f32.mrf.mxu0  ;;  %v387_v21 = vadd.f32 %v386_v49, %v261_v37 }
  0xeb   :  { %v1338_v41 = vpop.f32.mrf.mxu1 }
  0xec   :  { %v524_v52 = vpop.f32.mrf.mxu0 }
  0xed   :  { %v399_v51 = vpop.f32.mrf.mxu1  ;;  %v575_v31 = vadd.f32 %v524_v52, %v368_v9 }
  0xee   :  { %v1351_v53 = vpop.f32.mrf.mxu0 }
  0xef   :  { %v1339_v46 = vpop.f32.mrf.mxu1  ;;  %v578_v37 = vadd.f32 %v1351_v53, %v379_v16 }
  0xf0   :  { %v527_v55 = vpop.f32.mrf.mxu0  ;;  %v411_v36 = vadd.f32 %v1339_v46, %v1746_v20 }
  0xf1   :  { %v402_v54 = vpop.f32.mrf.mxu1 }
  0xf2   :  { %v1750_v56 = vpop.f32.mrf.mxu0 }
  0xf3   :  { %v1366_v2 = vpop.f32.mrf.mxu1 }
  0xf4   :  { %v540_v3 = vpop.f32.mrf.mxu0  ;;  %v765_v17 = vadd.f32 %v1366_v2, %v573_v1  ;;  %v572_v1 = vadd.f32 %v511_v43, %v355_v7  ;;  %v581_v43 = vadd.f32 %v1750_v56, %v392_v19 }
  0xf5   :  { %v700_v13 = vpop.f32.mrf.mxu1 }
  0xf6   :  { %v1355_v12 = vpop.f32.mrf.mxu0  ;;  %v763_v11 = vadd.f32 %v700_v13, %v571_v42 }
  0xf7   :  { %v1367_v57 = vpop.f32.mrf.mxu1 }
  0xf8   :  { %v1752_v14 = vpop.f32.mrf.mxu0  ;;  %v766_v29 = vadd.f32 %v1367_v57, %v574_v5 }
  0xf9   :  { %1837 = vst [vmem:[#allocation2_spill] sm:$0xff] %v1752_v14  ;;  %v703_v58 = vpop.f32.mrf.mxu1 }
  0xfa   :  { %v1754_v59 = vpop.f32.mrf.mxu0 }
  0xfb   :  { %1838 = vst [vmem:[#allocation3_spill] sm:$0xff] %v1754_v59  ;;  %v1370_v15 = vpop.f32.mrf.mxu1 }
  0xfc   :  { %v1756_v60 = vpop.f32.mrf.mxu0 }
  0xfd   :  { %v716_v61 = vpop.f32.mrf.mxu1 }
  0xfe   :  { %v1758_v32 = vpop.f32.mrf.mxu0  ;;  %v767_v13 = vadd.f32 %v716_v61, %v575_v31 }
  0xff   :  { %v1371_v62 = vpop.f32.mrf.mxu1 }
 0x100   :  { %v1760_v10 = vpop.f32.mrf.mxu0  ;;  %v1842_v53 = vld [vmem:[#allocation2_spill] sm:$0xff] }
 0x101   :  { %1839 = vst [vmem:[#allocation4_spill] sm:$0xff] %v1760_v10  ;;  %v1762_v22 = vpop.f32.mrf.mxu1  ;;  %v577_v10 = vadd.f32 %v1350_v50, %v376_v63 }
 0x102   :  { %1840 = vst [vmem:[#allocation5_spill] sm:$0xff] %v1762_v22  ;;  %v1386_v14 = vpop.f32.mrf.mxu0  ;;  %v371_v22 = vadd.f32 %v370_v38, %v245_v28  ;;  %v400_v28 = vadd.f32 %v399_v51, %v1744_v18  ;;  %v403_v38 = vadd.f32 %v402_v54, %v1748_v24  ;;  %v582_v18 = vadd.f32 %v1355_v12, %v395_v4  ;;  %v1843_v54 = vld [vmem:[#allocation3_spill] sm:$0xff] }
 0x103   :  { %v1764_v59 = vpop.f32.mrf.mxu1  ;;  %v937_v39 = vadd.f32 %v1386_v14, %v765_v17  ;;  %v769_v47 = vadd.f32 %v1370_v15, %v577_v10  ;;  %v580_v24 = vadd.f32 %v1842_v53, %v387_v21 }
 0x104   :  { %1841 = vst [vmem:[#allocation6_spill] sm:$0xff] %v1764_v59  ;;  %v872_v23 = vpop.f32.mrf.mxu0  ;;  %v408_v59 = vadd.f32 %v1338_v41, %v1742_v0  ;;  %v764_v0 = vadd.f32 %v703_v58, %v572_v1  ;;  %v576_v44 = vadd.f32 %v527_v55, %v371_v22  ;;  %v579_v41 = vadd.f32 %v540_v3, %v384_v27 }
 0x105   :  { %v732_v45 = vpop.f32.mrf.mxu1  ;;  %v955_v34 = vadd.f32 %v1769_v8, %v937_v39  ;;  %v935_v2 = vadd.f32 %v872_v23, %v763_v11  ;;  %v770_v55 = vadd.f32 %v1371_v62, %v578_v37  ;;  %v583_v61 = vadd.f32 %v1756_v60, %v400_v28 }
 0x106   :  { %v1387_v25 = vpop.f32.mrf.mxu0  ;;  %v585_v14 = vadd.f32 %v1843_v54, %v408_v59  ;;  %v586_v22 = vadd.f32 %v1758_v32, %v411_v36  ;;  %v771_v4 = vadd.f32 %v732_v45, %v579_v41 }
 0x107   :  { %v1375_v6 = vpop.f32.mrf.mxu1  ;;  %v953_v35 = vadd.f32 %v1769_v8, %v935_v2  ;;  %v938_v30 = vadd.f32 %v1387_v25, %v766_v29  ;;  %v971_v48 = vmax.f32 %v955_v34, 0.0 }
 0x108   :  { %v875_v40 = vpop.f32.mrf.mxu0  ;;  %v1844_v59 = vld [vmem:[#allocation4_spill] sm:$0xff]  ;;  %v774_v2 = vadd.f32 %v1375_v6, %v582_v18 }
 0x109   :  { %v956_v49 = vadd.f32 %v1776_v26, %v938_v30  ;;  %v735_v50 = vpop.f32.mrf.mxu1  ;;  %v936_v51 = vadd.f32 %v875_v40, %v764_v0  ;;  %v969_v57 = vmax.f32 %v953_v35, 0.0  ;;  %v995_v10 = vsel %vm985_vm7, %v971_v48, -inf  ;;  %v1845_v63 = vld [vmem:[#allocation5_spill] sm:$0xff] }
 0x10a   :  { %v1390_v52 = vpop.f32.mrf.mxu0  ;;  %v1793_v62 = vadd.f32 %v1844_v59, %v403_v38  ;;  %v768_v9 = vadd.f32 %v1845_v63, %v576_v44  ;;  %v772_v1 = vadd.f32 %v735_v50, %v580_v24 }
 0x10b   :  { %v972_v20 = vmax.f32 %v956_v49, 0.0  ;;  %v941_v46 = vadd.f32 %v1390_v52, %v769_v47  ;;  %v954_v58 = vadd.f32 %v1776_v26, %v936_v51  ;;  %v1378_v17 = vpop.f32.mrf.mxu1  ;;  %v986_v5 = vsel %vm985_vm7, %v969_v57, -inf  ;;  %v1846_v32 = vld [vmem:[#allocation6_spill] sm:$0xff] }
 0x10c   :  { %v888_v15 = vpop.f32.mrf.mxu0  ;;  %v773_v23 = vadd.f32 %v1846_v32, %v581_v43  ;;  %v777_v30 = vadd.f32 %v1378_v17, %v585_v14 }
 0x10d   :  { %v996_v56 = vsel %vm985_vm7, %v972_v20, -inf  ;;  %v959_v3 = vadd.f32 %v1769_v8, %v941_v46  ;;  %v939_v12 = vadd.f32 %v888_v15, %v767_v13  ;;  %v970_v42 = vmax.f32 %v954_v58, 0.0  ;;  %v748_v25 = vpop.f32.mrf.mxu1 }
 0x10e   :  { %v997_v33 = vmax.f32 %v995_v10, %v996_v56  ;;  %v1391_v7 = vpop.f32.mrf.mxu0  ;;  %v775_v41 = vadd.f32 %v748_v25, %v583_v61 }
 0x10f   :  { %v942_v11 = vadd.f32 %v1391_v7, %v770_v55  ;;  %v987_v16 = vsel %vm985_vm7, %v970_v42, -inf  ;;  %v975_v19 = vmax.f32 %v959_v3, 0.0  ;;  %v957_v60 = vadd.f32 %v1769_v8, %v939_v12  ;;  %v1379_v18 = vpop.f32.mrf.mxu1 }
 0x110   :  { %v998_v39 = vrot.slane %v997_v33, 4  ;;  %v891_v27 = vpop.f32.mrf.mxu0  ;;  %v988_v29 = vmax.f32 %v986_v5, %v987_v16  ;;  %v778_v15 = vadd.f32 %v1379_v18, %v586_v22 }
 0x111   :  { %v960_v34 = vadd.f32 %v1776_v26, %v942_v11  ;;  %v940_v28 = vadd.f32 %v891_v27, %v768_v9  ;;  %v1013_v0 = vsel %vm985_vm7, %v975_v19, -inf  ;;  %v973_v40 = vmax.f32 %v957_v60, 0.0 }
 0x112   :  { %v999_v21 = vmax.f32 %v997_v33, %v998_v39  ;;  %v1394_v31 = vpop.f32.mrf.mxu0  ;;  %v989_v35 = vrot.slane %v988_v29, 4 }
 0x113   :  { %v976_v36 = vmax.f32 %v960_v34, 0.0  ;;  %v945_v37 = vadd.f32 %v1394_v31, %v773_v23  ;;  %v958_v44 = vadd.f32 %v1776_v26, %v940_v28  ;;  %v1004_v24 = vsel %vm985_vm7, %v973_v40, -inf }
 0x114   :  { %v1000_v38 = vrot.slane %v999_v21, 2  ;;  %v904_v45 = vpop.f32.mrf.mxu0  ;;  %v990_v47 = vmax.f32 %v988_v29, %v989_v35 }
 0x115   :  { %v1014_v48 = vsel %vm985_vm7, %v976_v36, -inf  ;;  %v963_v6 = vadd.f32 %v1769_v8, %v945_v37  ;;  %v943_v49 = vadd.f32 %v904_v45, %v771_v4  ;;  %v974_v51 = vmax.f32 %v958_v44, 0.0 }
 0x116   :  { %v1001_v43 = vmax.f32 %v999_v21, %v1000_v38  ;;  %v1015_v50 = vmax.f32 %v1013_v0, %v1014_v48  ;;  %v1395_v52 = vpop.f32.mrf.mxu0  ;;  %v991_v13 = vrot.slane %v990_v47, 2 }
 0x117   :  { %v979_v57 = vmax.f32 %v963_v6, 0.0  ;;  %v961_v20 = vadd.f32 %v1769_v8, %v943_v49  ;;  %v946_v46 = vadd.f32 %v1395_v52, %v774_v2  ;;  %v1005_v14 = vsel %vm985_vm7, %v974_v51, -inf }
 0x118   :  { %v1002_v53 = vrot.slane %v1001_v43, 1  ;;  %v1016_v54 = vrot.slane %v1015_v50, 4  ;;  %v907_v55 = vpop.f32.mrf.mxu0  ;;  %v992_v58 = vmax.f32 %v990_v47, %v991_v13  ;;  %v1006_v10 = vmax.f32 %v1004_v24, %v1005_v14 }
 0x119   :  { %v977_v56 = vmax.f32 %v961_v20, 0.0  ;;  %v964_v61 = vadd.f32 %v1776_v26, %v946_v46  ;;  %v944_v33 = vadd.f32 %v907_v55, %v772_v1  ;;  %v1031_v59 = vsel %vm985_vm7, %v979_v57, -inf  ;;  %v751_v1 = vpop.f32.mrf.mxu1 }
 0x11a   :  { %v1003_v3 = vmax.f32 %v1001_v43, %v1002_v53  ;;  %v1017_v12 = vmax.f32 %v1015_v50, %v1016_v54  ;;  %v1398_v42 = vpop.f32.mrf.mxu0  ;;  %v993_v17 = vrot.slane %v992_v58, 1  ;;  %v1007_v7 = vrot.slane %v1006_v10, 4 }
 0x11b   :  { %v949_v63 = vadd.f32 %v1398_v42, %v777_v30  ;;  %v980_v11 = vmax.f32 %v964_v61, 0.0  ;;  %v962_v39 = vadd.f32 %v1776_v26, %v944_v33  ;;  %v1022_v60 = vsel %vm985_vm7, %v977_v56, -inf }
 0x11c   :  { %v1059_v9 = vpack.c.bf16 %v1003_v3, %v1003_v3  ;;  %v1018_v5 = vrot.slane %v1017_v12, 2  ;;  %v920_v16 = vpop.f32.mrf.mxu0  ;;  %v994_v22 = vmax.f32 %v992_v58, %v993_v17  ;;  %v1008_v19 = vmax.f32 %v1006_v10, %v1007_v7 }
 0x11d   :  { %v967_v27 = vadd.f32 %v1769_v8, %v949_v63  ;;  %v1032_v23 = vsel %vm985_vm7, %v980_v11, -inf  ;;  %v978_v4 = vmax.f32 %v962_v39, 0.0  ;;  %v947_v29 = vadd.f32 %v920_v16, %v775_v41 }
 0x11e   :  { %v1019_v32 = vmax.f32 %v1017_v12, %v1018_v5  ;;  %v1399_v34 = vpop.f32.mrf.mxu0  ;;  %v1085_v2 = vunpack.c.l.b16 %v1059_v9  ;;  %v1058_v21 = vpack.c.bf16 %v994_v22, %v994_v22  ;;  %v1009_v25 = vrot.slane %v1008_v19, 2 }
 0x11f   :  { %v1033_v28 = vmax.f32 %v1031_v59, %v1032_v23  ;;  %v1023_v35 = vsel %vm985_vm7, %v978_v4, -inf  ;;  %v983_v30 = vmax.f32 %v967_v27, 0.0  ;;  %v950_v36 = vadd.f32 %v1399_v34, %v778_v15 }
 0x120   :  { %v1020_v31 = vrot.slane %v1019_v32, 1  ;;  %v1084_v37 = vunpack.c.l.b16 %v1058_v21  ;;  %v1010_v38 = vmax.f32 %v1008_v19, %v1009_v25  ;;  %v1024_v40 = vmax.f32 %v1022_v60, %v1023_v35  ;;  %v923_v44 = vpop.f32.mrf.mxu0 }
 0x121   :  { %v1034_v0 = vrot.slane %v1033_v28, 4  ;;  %v776_v47 = vadd.f32 %v751_v1, %v1793_v62  ;;  %v965_v48 = vadd.f32 %v1769_v8, %v947_v29  ;;  %v968_v6 = vadd.f32 %v1776_v26, %v950_v36 }
 0x122   :  { %v1021_v45 = vmax.f32 %v1019_v32, %v1020_v31  ;;  %v1093_v49 = vsel %vm1092_vm8, %v1085_v2, %v1084_v37  ;;  %v1011_v43 = vrot.slane %v1010_v38, 1  ;;  %v1025_v18 = vrot.slane %v1024_v40, 4 }
 0x123   :  { %v1035_v41 = vmax.f32 %v1033_v28, %v1034_v0  ;;  %v984_v50 = vmax.f32 %v968_v6, 0.0  ;;  %v948_v51 = vadd.f32 %v923_v44, %v776_v47  ;;  %v1049_v57 = vsel %vm985_vm7, %v983_v30, -inf }
 0x124   :  { %v1012_v52 = vmax.f32 %v1010_v38, %v1011_v43  ;;  %v1026_v13 = vmax.f32 %v1024_v40, %v1025_v18  ;;  %v1061_v20 = vpack.c.bf16 %v1021_v45, %v1021_v45  ;;  %v981_v46 = vmax.f32 %v965_v48, 0.0  ;;  %v1243_v38 = vld [vmem:[%s1835_s4] ss:$0 sm:$0xff] }
 0x125   :  { %v1050_v53 = vsel %vm985_vm7, %v984_v50, -inf  ;;  %v966_v62 = vadd.f32 %v1776_v26, %v948_v51  ;;  %v1036_v24 = vrot.slane %v1035_v41, 2 }
 0x126   :  { %v1060_v8 = vpack.c.bf16 %v1012_v52, %v1012_v52  ;;  %v1027_v54 = vrot.slane %v1026_v13, 2  ;;  %v1051_v14 = vmax.f32 %v1049_v57, %v1050_v53  ;;  %v1087_v56 = vunpack.c.l.b16 %v1061_v20 }
 0x127   :  { %v982_v55 = vmax.f32 %v966_v62, 0.0  ;;  %v1040_v3 = vsel %vm985_vm7, %v981_v46, -inf  ;;  %v1037_v33 = vmax.f32 %v1035_v41, %v1036_v24 }
 0x128   :  { %v1086_v58 = vunpack.c.l.b16 %v1060_v8  ;;  %v1028_v15 = vmax.f32 %v1026_v13, %v1027_v54  ;;  %v1052_v10 = vrot.slane %v1051_v14, 4 }
 0x129   :  { %v1041_v12 = vsel %vm985_vm7, %v982_v55, -inf  ;;  %v1038_v5 = vrot.slane %v1037_v33, 1 }
 0x12a   :  { %v1095_v61 = vsel %vm1094_vm9, %v1086_v58, %v1093_v49  ;;  %v1029_v42 = vrot.slane %v1028_v15, 1  ;;  %v1053_v17 = vmax.f32 %v1051_v14, %v1052_v10  ;;  %v1042_v7 = vmax.f32 %v1040_v3, %v1041_v12 }
 0x12b   :  { %v1097_v26 = vsel %vm1096_vm10, %v1087_v56, %v1095_v61  ;;  %v1039_v60 = vmax.f32 %v1037_v33, %v1038_v5 }
 0x12c   :  { %v1054_v59 = vrot.slane %v1053_v17, 2  ;;  %v1030_v63 = vmax.f32 %v1028_v15, %v1029_v42  ;;  %v1043_v9 = vrot.slane %v1042_v7, 4 }
 0x12d   :  { %v1063_v29 = vpack.c.bf16 %v1039_v60, %v1039_v60 }
 0x12e   :  { %v1055_v11 = vmax.f32 %v1053_v17, %v1054_v59  ;;  %v1044_v39 = vmax.f32 %v1042_v7, %v1043_v9  ;;  %v1062_v22 = vpack.c.bf16 %v1030_v63, %v1030_v63 }
 0x12f   :  { %v1089_v25 = vunpack.c.l.b16 %v1063_v29 }
 0x130   :  { %v1056_v16 = vrot.slane %v1055_v11, 1  ;;  %v1045_v19 = vrot.slane %v1044_v39, 2  ;;  %v1088_v23 = vunpack.c.l.b16 %v1062_v22 }
 0x132   :  { %v1046_v27 = vmax.f32 %v1044_v39, %v1045_v19  ;;  %v1057_v32 = vmax.f32 %v1055_v11, %v1056_v16  ;;  %v1099_v21 = vsel %vm1098_vm11, %v1088_v23, %v1097_v26 }
 0x133   :  { %v1101_v35 = vsel %vm1100_vm12, %v1089_v25, %v1099_v21 }
 0x134   :  { %v1047_v4 = vrot.slane %v1046_v27, 1  ;;  %v1065_v2 = vpack.c.bf16 %v1057_v32, %v1057_v32 }
 0x136   :  { %v1048_v34 = vmax.f32 %v1046_v27, %v1047_v4  ;;  %v1091_v31 = vunpack.c.l.b16 %v1065_v2 }
 0x138   :  { %v1064_v1 = vpack.c.bf16 %v1048_v34, %v1048_v34 }
 0x13a   :  { %v1090_v28 = vunpack.c.l.b16 %v1064_v1 }
 0x13c   :  { %v1103_v30 = vsel %vm1102_vm13, %v1090_v28, %v1101_v35 }
 0x13d   :  { %v1105_v36 = vsel %vm1104_vm14, %v1091_v31, %v1103_v30 }
 0x13e   :  { %v1106_v37 = vpack.c.b16 %v1105_v36, %v1105_v36 }
 0x140   :  { %1405 = vmatmul.mubr.msk.bf16.vlgmr.msra.gmra.mxu1 %vm985_vm7, %v1106_v37 }
 0x200   :  { %v1157_v0 = vpop.f32.mrf.mxu1 }
 0x201   :  { %v1158_v40 = vadd.f32 %v1243_v38, %v1157_v0 }
 0x202   :  { %v1406_v44 = vpop.f32.mrf.mxu1 }
 0x203   :  { %1164 = vst.msk [vmem:[%s1836_s5] sm:$0xff] %vm1163_vm15, %v1158_v40 }
 0x204   :  { %v1160_v45 = vpop.f32.mrf.mxu1 }
 0x206   :  { %v1407_v47 = vpop.f32.mrf.mxu1 }

</bundles_post_ra>
